<compile_context>
chip_gen: v6e
topology: v6e:2x2x1
jax: 0.10.0
libtpu: 0.0.40
codegen_flags: <defaults>
</compile_context>

<pallas_src>
import functools

import jax
import jax.numpy as jnp
import numpy as np
from jax.experimental import pallas as pl
from jax.experimental.pallas import tpu as pltpu


# ----------------------------------------------------------------------------
# Kernel
# ----------------------------------------------------------------------------
def _cbp_kernel(x1_ref, x2_ref, w1_ref, w2_ref, cs_ref, *rest, sum_pool, kp):
    """One grid step: `bb` batch elements flattened to [M, C] rows.

    x*_ref : [1, M, C]   bf16 activations
    w*_ref : [C, 2*Kp]   bf16 folded (count-sketch @ forward-half-DFT), [cos|sin]
    cs_ref : [2*Kp, Dp]  f32  inverse half-DFT, [COS ; SIN] with symmetry weights
    pool_ref (sum_pool only): [Bb, M] f32 block-ones pooling matrix
    o_ref  : [1, Bb, Dp] or [1, M, Dp]
    """
    if sum_pool:
        pool_ref, o_ref = rest
    else:
        (o_ref,) = rest

    x1 = x1_ref[0]                      # [M, C] bf16
    x2 = x2_ref[0]

    # Fused forward transform: one [M,C]@[C,2Kp] bf16 matmul per input, f32 acc.
    fg1 = jnp.dot(x1, w1_ref[...], preferred_element_type=jnp.float32)
    fg2 = jnp.dot(x2, w2_ref[...], preferred_element_type=jnp.float32)
    f1, g1 = fg1[:, :kp], fg1[:, kp:]   # Re / -Im of rfft(x @ sketch)
    f2, g2 = fg2[:, :kp], fg2[:, kp:]

    # Pointwise complex product on the VPU (F = f - i*g):
    #   Re(F1*F2) = f1*f2 - g1*g2 ,  -Im(F1*F2) = f1*g2 + g1*f2
    qr = f1 * f2 - g1 * g2
    qi = f1 * g2 + g1 * f2
    qrqi = jnp.concatenate([qr, qi], axis=-1)          # [M, 2*Kp] f32

    if sum_pool:
        # Frequency-domain pooling as an MXU matmul: [Bb, M] @ [M, 2Kp].
        qrqi = jnp.dot(pool_ref[...], qrqi, preferred_element_type=jnp.float32)

    # Fused un-normalized inverse half-DFT (the 1/D cancels the "* output_dim"
    # scale of the reference): one matmul, K = 2*Kp.  Kept in f32 for accuracy.
    out = jnp.dot(qrqi, cs_ref[...], preferred_element_type=jnp.float32)
    o_ref[0] = out.astype(o_ref.dtype)


# ----------------------------------------------------------------------------
# Host-side constant construction (cached)
# ----------------------------------------------------------------------------
@functools.lru_cache(maxsize=16)
def _dft_matrices(d, kp, dp):
    """Forward half-DFT [D,Kp]x2 and inverse half-DFT [2Kp,Dp] (weights folded)."""
    kb = d // 2 + 1
    n = np.arange(d, dtype=np.float64)
    k = np.arange(kb, dtype=np.float64)

    ang_f = 2.0 * np.pi * np.outer(n, k) / d          # [D, Kb]
    fwd_cos = np.zeros((d, kp), np.float32)
    fwd_sin = np.zeros((d, kp), np.float32)
    fwd_cos[:, :kb] = np.cos(ang_f)
    fwd_sin[:, :kb] = np.sin(ang_f)

    # Conjugate-symmetry weights: DC and (even-D) Nyquist count once, rest twice.
    w = np.full((kb,), 2.0)
    w[0] = 1.0
    if d % 2 == 0:
        w[-1] = 1.0
    ang_i = 2.0 * np.pi * np.outer(k, n) / d          # [Kb, D]
    cs = np.zeros((2 * kp, dp), np.float32)
    cs[:kb, :d] = w[:, None] * np.cos(ang_i)
    cs[kp:kp + kb, :d] = w[:, None] * np.sin(ang_i)
    return fwd_cos, fwd_sin, cs


def _vmem_capacity_bytes():
    try:
        return int(pltpu.get_tpu_info().vmem_capacity_bytes)
    except Exception:
        return 64 * 1024 * 1024          # conservative (v7x-sized) fallback


def _choose_block_batch(B, HW, C, Kp, Dp, sum_pool, vmem_budget, target_rows=2048):
    """Largest divisor of B whose per-step VMEM footprint fits the budget,
    capped at B//2 so the grid has >= 2 steps (v7x dual-TensorCore)."""
    best = 1
    for bb in range(1, B + 1):
        if B % bb:
            continue
        if B >= 2 and bb > B // 2:
            continue
        m = bb * HW
        if m > max(target_rows, HW):
            continue
        x_bytes = 2 * 2 * m * C * 2                 # 2 inputs, dbl-buffered, bf16
        w_bytes = 2 * 2 * C * (2 * Kp) * 2          # 2 folded weights, dbl-buf, bf16
        cs_bytes = 2 * (2 * Kp) * Dp * 4            # inverse DFT, dbl-buf, f32
        pool_bytes = 2 * bb * m * 4 if sum_pool else 0
        interm = 4 * m * (2 * Kp) * 4               # fg1, fg2, qrqi + headroom (f32)
        out_rows = bb if sum_pool else m
        out_bytes = 2 * out_rows * Dp * 4
        if x_bytes + w_bytes + cs_bytes + pool_bytes + interm + out_bytes <= vmem_budget:
            best = bb
    return best


# ----------------------------------------------------------------------------
# Wrapper
# ----------------------------------------------------------------------------
def compact_bilinear_pooling(x1, x2, sketch1, sketch2, output_dim, sum_pool=True):
    B, H, W, C = x1.shape
    assert x2.shape == x1.shape
    HW = H * W
    D = int(output_dim)

    Kb = D // 2 + 1
    Kp = ((max(Kb, 128) + 127) // 128) * 128          # half-spectrum width, lane-aligned
    Dp = ((max(D, 128) + 127) // 128) * 128           # lane-dense output width

    fwd_cos, fwd_sin, cs_np = _dft_matrices(D, Kp, Dp)

    # Fold the count-sketch into the forward half-DFT: W = sketch @ [cos|sin].
    hi = jax.lax.Precision.HIGHEST
    mxu_dtype = jnp.bfloat16

    def fold(sketch):
        sk = sketch.astype(jnp.float32)
        w = jnp.concatenate(
            [jnp.matmul(sk, jnp.asarray(fwd_cos), precision=hi),
             jnp.matmul(sk, jnp.asarray(fwd_sin), precision=hi)], axis=1)
        return w.astype(mxu_dtype)                    # [C, 2*Kp]

    w1 = fold(sketch1)
    w2 = fold(sketch2)
    cs = jnp.asarray(cs_np)                           # [2*Kp, Dp] f32

    vmem_cap = _vmem_capacity_bytes()
    vmem_limit = int(min(vmem_cap * 3 // 4, 96 * 1024 * 1024))

    Bb = _choose_block_batch(B, HW, C, Kp, Dp, sum_pool,
                             vmem_budget=int(vmem_limit * 0.8))
    nb = B // Bb
    M = Bb * HW

    # Stream activations as bf16 (halves input DMA bytes); reshape is a view.
    x1f = x1.astype(mxu_dtype).reshape(nb, M, C)
    x2f = x2.astype(mxu_dtype).reshape(nb, M, C)

    x_spec = pl.BlockSpec((1, M, C), lambda i: (i, 0, 0))
    w_spec = pl.BlockSpec((C, 2 * Kp), lambda i: (0, 0))
    cs_spec = pl.BlockSpec((2 * Kp, Dp), lambda i: (0, 0))
    in_specs = [x_spec, x_spec, w_spec, w_spec, cs_spec]
    operands = [x1f, x2f, w1, w2, cs]

    if sum_pool:
        pool = jnp.asarray(np.kron(np.eye(Bb, dtype=np.float32),
                                   np.ones((1, HW), np.float32)))   # [Bb, M]
        in_specs.append(pl.BlockSpec((Bb, M), lambda i: (0, 0)))
        operands.append(pool)
        out_shape = jax.ShapeDtypeStruct((nb, Bb, Dp), jnp.float32)
        out_spec = pl.BlockSpec((1, Bb, Dp), lambda i: (i, 0, 0))
    else:
        out_shape = jax.ShapeDtypeStruct((nb, M, Dp), jnp.float32)
        out_spec = pl.BlockSpec((1, M, Dp), lambda i: (i, 0, 0))

    kernel = functools.partial(_cbp_kernel, sum_pool=sum_pool, kp=Kp)

    out = pl.pallas_call(
        kernel,
        out_shape=out_shape,
        grid_spec=pltpu.PrefetchScalarGridSpec(
            num_scalar_prefetch=0,
            grid=(nb,),
            in_specs=in_specs,
            out_specs=out_spec,
        ),
        compiler_params=pltpu.CompilerParams(
            dimension_semantics=("parallel",),
            vmem_limit_bytes=vmem_limit,
        ),
    )(*operands)

    if sum_pool:
        return out.reshape(B, Dp)[:, :D]
    return out.reshape(B, H, W, Dp)[..., :D]


# ----------------------------------------------------------------------------
# Test utilities
# ----------------------------------------------------------------------------
def make_sketch(key, input_dim, output_dim):
    """Deterministic equivalent of the torch sparse count-sketch matrix."""
    kh, ks = jax.random.split(key)
    rand_h = jax.random.randint(kh, (input_dim,), 0, output_dim)
    rand_s = (2 * jax.random.randint(ks, (input_dim,), 0, 2) - 1).astype(jnp.float32)
    return jax.nn.one_hot(rand_h, output_dim, dtype=jnp.float32) * rand_s[:, None]


def cbp_reference(x1, x2, sketch1, sketch2, output_dim, sum_pool=True):
    """Plain-JAX FFT reference (intended torch rfft/irfft semantics)."""
    hi = jax.lax.Precision.HIGHEST
    s1 = jnp.matmul(x1.astype(jnp.float32), sketch1, precision=hi)
    s2 = jnp.matmul(x2.astype(jnp.float32), sketch2, precision=hi)
    f1 = jnp.fft.rfft(s1, axis=-1)
    f2 = jnp.fft.rfft(s2, axis=-1)
    cbp = jnp.fft.irfft(f1 * f2, n=output_dim, axis=-1) * output_dim
    return cbp.sum(axis=(1, 2)) if sum_pool else cbp


if __name__ == "__main__":
    key = jax.random.PRNGKey(0)
    # bf16 forward matmuls -> compare with a normalized-max-error tolerance.
    TOL = 3e-2

    # ---- test 1: small config, sum_pool=True (exercises Bb>1 pooling matmul) ----
    B, H, W, C, D = 4, 8, 8, 16, 16
    k1, k2, k3, k4, key = jax.random.split(key, 5)
    x1 = jax.random.normal(k1, (B, H, W, C), dtype=jnp.float32)
    x2 = jax.random.normal(k2, (B, H, W, C), dtype=jnp.float32)
    sk1 = make_sketch(k3, C, D)
    sk2 = make_sketch(k4, C, D)

    out = jax.block_until_ready(
        compact_bilinear_pooling(x1, x2, sk1, sk2, D, sum_pool=True))
    ref = jax.block_until_ready(cbp_reference(x1, x2, sk1, sk2, D, sum_pool=True))
    assert out.shape == (B, D)
    err = float(jnp.max(jnp.abs(out - ref)) / jnp.max(jnp.abs(ref)))
    assert err < TOL, f"sum_pool=True normalized error too large: {err}"

    # ---- test 2: lane-aligned D, sum_pool=False ----
    B, H, W, C, D = 2, 4, 4, 32, 128
    k1, k2, k3, k4, key = jax.random.split(key, 5)
    x1 = jax.random.normal(k1, (B, H, W, C), dtype=jnp.float32)
    x2 = jax.random.normal(k2, (B, H, W, C), dtype=jnp.float32)
    sk1 = make_sketch(k3, C, D)
    sk2 = make_sketch(k4, C, D)

    out = jax.block_until_ready(
        compact_bilinear_pooling(x1, x2, sk1, sk2, D, sum_pool=False))
    ref = jax.block_until_ready(cbp_reference(x1, x2, sk1, sk2, D, sum_pool=False))
    assert out.shape == (B, H, W, D)
    err = float(jnp.max(jnp.abs(out - ref)) / jnp.max(jnp.abs(ref)))
    assert err < TOL, f"sum_pool=False normalized error too large: {err}"

    print("KERNEL_OK")
</pallas_src>

<mosaic_0001>
module attributes {stable_mosaic.version = 11 : i64} {
  func.func @_cbp_kernel(%arg0: i32, %arg1: memref<1x128x16xbf16, #tpu.memory_space<vmem>>, %arg2: memref<1x128x16xbf16, #tpu.memory_space<vmem>>, %arg3: memref<16x256xbf16, #tpu.memory_space<vmem>>, %arg4: memref<16x256xbf16, #tpu.memory_space<vmem>>, %arg5: memref<256x128xf32, #tpu.memory_space<vmem>>, %arg6: memref<2x128xf32, #tpu.memory_space<vmem>>, %arg7: memref<1x2x128xf32, #tpu.memory_space<vmem>>) attributes {dimension_semantics = [#tpu.dimension_semantics<parallel>], iteration_bounds = array<i64: 2>, scalar_prefetch = 0 : i64, scratch_operands = 0 : i64, tpu.core_type = #tpu.core_type<tc>, window_params = [{transform_indices = @transform_0, window_bounds = array<i64: 1, 128, 16>}, {transform_indices = @transform_1, window_bounds = array<i64: 1, 128, 16>}, {pipeline_mode = #tpu.pipeline_mode<synchronous>, transform_indices = @transform_2, window_bounds = array<i64: 16, 256>}, {pipeline_mode = #tpu.pipeline_mode<synchronous>, transform_indices = @transform_3, window_bounds = array<i64: 16, 256>}, {pipeline_mode = #tpu.pipeline_mode<synchronous>, transform_indices = @transform_4, window_bounds = array<i64: 256, 128>}, {pipeline_mode = #tpu.pipeline_mode<synchronous>, transform_indices = @transform_5, window_bounds = array<i64: 2, 128>}, {transform_indices = @transform_6, window_bounds = array<i64: 1, 2, 128>}]} {
    %c0 = arith.constant 0 : index
    %c0_0 = arith.constant 0 : index
    %c0_1 = arith.constant 0 : index
    %0 = vector.load %arg1[%c0, %c0_0, %c0_1] : memref<1x128x16xbf16, #tpu.memory_space<vmem>>, vector<1x128x16xbf16>
    %1 = vector.shape_cast %0 : vector<1x128x16xbf16> to vector<128x16xbf16>
    %c0_2 = arith.constant 0 : index
    %c0_3 = arith.constant 0 : index
    %c0_4 = arith.constant 0 : index
    %2 = vector.load %arg2[%c0_2, %c0_3, %c0_4] : memref<1x128x16xbf16, #tpu.memory_space<vmem>>, vector<1x128x16xbf16>
    %3 = vector.shape_cast %2 : vector<1x128x16xbf16> to vector<128x16xbf16>
    %c0_5 = arith.constant 0 : index
    %c0_6 = arith.constant 0 : index
    %4 = vector.load %arg3[%c0_5, %c0_6] : memref<16x256xbf16, #tpu.memory_space<vmem>>, vector<16x256xbf16>
    %cst = arith.constant dense<0.000000e+00> : vector<128x256xf32>
    %5 = tpu.matmul %1, %4, %cst {dimension_numbers = #tpu.dot_dimension_numbers<[1], [0], [0], [1], [0, 0, 1, 1], [], []>} : vector<128x16xbf16>, vector<16x256xbf16>, vector<128x256xf32> -> vector<128x256xf32>
    %c0_7 = arith.constant 0 : index
    %c0_8 = arith.constant 0 : index
    %6 = vector.load %arg4[%c0_7, %c0_8] : memref<16x256xbf16, #tpu.memory_space<vmem>>, vector<16x256xbf16>
    %cst_9 = arith.constant dense<0.000000e+00> : vector<128x256xf32>
    %7 = tpu.matmul %3, %6, %cst_9 {dimension_numbers = #tpu.dot_dimension_numbers<[1], [0], [0], [1], [0, 0, 1, 1], [], []>} : vector<128x16xbf16>, vector<16x256xbf16>, vector<128x256xf32> -> vector<128x256xf32>
    %8 = vector.extract_strided_slice %5 {offsets = [0, 0], sizes = [128, 128], strides = [1, 1]} : vector<128x256xf32> to vector<128x128xf32>
    %9 = vector.extract_strided_slice %5 {offsets = [0, 128], sizes = [128, 128], strides = [1, 1]} : vector<128x256xf32> to vector<128x128xf32>
    %10 = vector.extract_strided_slice %7 {offsets = [0, 0], sizes = [128, 128], strides = [1, 1]} : vector<128x256xf32> to vector<128x128xf32>
    %11 = vector.extract_strided_slice %7 {offsets = [0, 128], sizes = [128, 128], strides = [1, 1]} : vector<128x256xf32> to vector<128x128xf32>
    %12 = arith.mulf %8, %10 : vector<128x128xf32>
    %13 = arith.mulf %9, %11 : vector<128x128xf32>
    %14 = arith.subf %12, %13 : vector<128x128xf32>
    %15 = arith.mulf %8, %11 : vector<128x128xf32>
    %16 = arith.mulf %9, %10 : vector<128x128xf32>
    %17 = arith.addf %15, %16 : vector<128x128xf32>
    %18 = tpu.concatenate %14, %17 in 1 : vector<128x128xf32>, vector<128x128xf32> -> vector<128x256xf32>
    %c0_10 = arith.constant 0 : index
    %c0_11 = arith.constant 0 : index
    %19 = vector.load %arg6[%c0_10, %c0_11] : memref<2x128xf32, #tpu.memory_space<vmem>>, vector<2x128xf32>
    %cst_12 = arith.constant dense<0.000000e+00> : vector<2x256xf32>
    %20 = tpu.matmul %19, %18, %cst_12 {dimension_numbers = #tpu.dot_dimension_numbers<[1], [0], [0], [1], [0, 0, 1, 1], [], []>} : vector<2x128xf32>, vector<128x256xf32>, vector<2x256xf32> -> vector<2x256xf32>
    %c0_13 = arith.constant 0 : index
    %c0_14 = arith.constant 0 : index
    %21 = vector.load %arg5[%c0_13, %c0_14] : memref<256x128xf32, #tpu.memory_space<vmem>>, vector<256x128xf32>
    %cst_15 = arith.constant dense<0.000000e+00> : vector<2x128xf32>
    %22 = tpu.matmul %20, %21, %cst_15 {dimension_numbers = #tpu.dot_dimension_numbers<[1], [0], [0], [1], [0, 0, 1, 1], [], []>} : vector<2x256xf32>, vector<256x128xf32>, vector<2x128xf32> -> vector<2x128xf32>
    %c0_16 = arith.constant 0 : index
    %c0_17 = arith.constant 0 : index
    %c0_18 = arith.constant 0 : index
    %23 = vector.load %arg7[%c0_16, %c0_17, %c0_18] : memref<1x2x128xf32, #tpu.memory_space<vmem>>, vector<1x2x128xf32>
    %24 = vector.shape_cast %23 : vector<1x2x128xf32> to vector<2x128xf32>
    %25 = vector.shape_cast %22 : vector<2x128xf32> to vector<1x2x128xf32>
    tpu.vector_store %arg7[%c0_16, %c0_17, %c0_18], %25 {strides = array<i32>} : memref<1x2x128xf32, #tpu.memory_space<vmem>>, vector<1x2x128xf32>,
    return
  }
  func.func @transform_0(%arg0: i32) -> (i32, i32, i32) {
    %c0_i32 = arith.constant 0 : i32
    %c0_i32_0 = arith.constant 0 : i32
    %c0_i32_1 = arith.constant 0 : i32
    return %arg0, %c0_i32, %c0_i32_0 : i32, i32, i32
  }
  func.func @transform_1(%arg0: i32) -> (i32, i32, i32) {
    %c0_i32 = arith.constant 0 : i32
    %c0_i32_0 = arith.constant 0 : i32
    %c0_i32_1 = arith.constant 0 : i32
    return %arg0, %c0_i32, %c0_i32_0 : i32, i32, i32
  }
  func.func @transform_2(%arg0: i32) -> (i32, i32) {
    %c0_i32 = arith.constant 0 : i32
    %c0_i32_0 = arith.constant 0 : i32
    %c0_i32_1 = arith.constant 0 : i32
    return %c0_i32, %c0_i32_0 : i32, i32
  }
  func.func @transform_3(%arg0: i32) -> (i32, i32) {
    %c0_i32 = arith.constant 0 : i32
    %c0_i32_0 = arith.constant 0 : i32
    %c0_i32_1 = arith.constant 0 : i32
    return %c0_i32, %c0_i32_0 : i32, i32
  }
  func.func @transform_4(%arg0: i32) -> (i32, i32) {
    %c0_i32 = arith.constant 0 : i32
    %c0_i32_0 = arith.constant 0 : i32
    %c0_i32_1 = arith.constant 0 : i32
    return %c0_i32, %c0_i32_0 : i32, i32
  }
  func.func @transform_5(%arg0: i32) -> (i32, i32) {
    %c0_i32 = arith.constant 0 : i32
    %c0_i32_0 = arith.constant 0 : i32
    %c0_i32_1 = arith.constant 0 : i32
    return %c0_i32, %c0_i32_0 : i32, i32
  }
  func.func @transform_6(%arg0: i32) -> (i32, i32, i32) {
    %c0_i32 = arith.constant 0 : i32
    %c0_i32_0 = arith.constant 0 : i32
    %c0_i32_1 = arith.constant 0 : i32
    return %arg0, %c0_i32, %c0_i32_0 : i32, i32, i32
  }
}

</mosaic_0001>

<bundles_post_ra>
// kernel: tpu_custom_call.1
= control target key start
LH: loop header
LB: loop body
LE: loop exit
PB: predicated region body
PF: predicated region fallthrough
CT: control target
= control target key end

     0   :  { %11 = vsyncpa [#allocation3], 0  ;;  %s1672_s0 = inlined_call_operand.vmem [shape: bf16[2,128,16], index: 0, kind: input, shape index: {}]   ;;  %s1673_s1 = inlined_call_operand.vmem [shape: bf16[2,128,16], index: 1, kind: input, shape index: {}]   ;;  %s1674_s2 = inlined_call_operand.vmem [shape: bf16[16,256], index: 2, kind: input, shape index: {}]   ;;  %s1675_s3 = inlined_call_operand.vmem [shape: bf16[16,256], index: 3, kind: input, shape index: {}]   ;;  %s1676_s4 = inlined_call_operand.vmem [shape: f32[256,128], index: 4, kind: input, shape index: {}]   ;;  %s1677_s5 = inlined_call_operand.vmem [shape: f32[2,128], index: 5, kind: input, shape index: {}]   ;;  %s1678_s6 = inlined_call_operand.hbm [shape: f32[2,2,128], index: 6, kind: output, shape index: {}]  }
   0x1   :  { %13 = vsyncpa [#allocation3 + $0x1], 0  ;;  %s1287_s21 = smov 0   ;;  %s1289_s22 = smov 0  }
   0x2   :  { %s1291_s23 = smov 0   ;;  %s1293_s24 = smov 0  }
   0x3 LB: > { %s1308_s25 = sadd.s32 4294967295, %s1247_s24   ;;  %s1038_s26 = sadd.s32 4294967294, %s1247_s24   ;;  %s1247_s24 = sphi %s1293_s24, %s1732_s24   ;;  %s1243_s23 = sphi %s1291_s23, %s1731_s23   ;;  %s1239_s22 = sphi %s1289_s22, %s1730_s22   ;;  %s1235_s21 = sphi %s1287_s21, %s1729_s21  }
   0x4   : > { %s1312_s27 = sadd.s32 1, %s1247_s24   ;;  %s162_s28 = sadd.s32 1, %s1243_s23 }
   0x5   : > { %s159_s29 = ssub.s32 %s1247_s24, %s1312_s27  ;;  %p172_p0 = scmp.ne.s32.totalorder %s1243_s23, %s1239_s22 }
   0x6   : > { %p160_p1 = scmp.eq.s32.totalorder %s159_s29, 0  ;;  %p173_p2 = scmp.eq.s32.totalorder %s1308_s25, 1 }
   0x7   : > { %p178_p3 = scmp.ne.s32.totalorder %s1239_s22, %s1235_s21  ;;  %p179_p4 = scmp.eq.s32.totalorder %s1038_s26, 1 }
   0x8   : > { %s1323_s30 = scalar_select %p160_p1, %s1243_s23, %s162_s28  }
   0x9   : > { %p1325_p5 = por %p173_p2, %p172_p0  ;;  %p1329_p6 = por %p179_p4, %p178_p3 }
   0xa   : > { %p1041_p7 = scmp.ge.s32.totalorder %s1247_s24, 1  ;;  %p225_p8 = scmp.lt.s32.totalorder %s1247_s24, 3 }
   0xc   : > { %p226_p9 = pnand %p1041_p7, %p225_p8 }
   0xe   : > { %229 = sbr.rel (%p226_p9) target bundleno = 724 (0x2d4), region = 44 }
  0x13   : > { %v1165_v0 = vld [vmem:[%s1674_s2 + $0x4] ss:$8 sps:$4 sm:$0xff]   ;;  %p260_p10 = scmp.lt.s32.totalorder %s1308_s25, 1  ;;  %v1249_v2 = vmov 0   ;;  %v1169_v3 = vld [vmem:[%s1674_s2] ss:$8 sps:$4 sm:$0xff]  }
  0x14   : > { %v1167_v1 = vld [vmem:[%s1675_s3 + $0x4] ss:$8 sps:$4 sm:$0xff]   ;;  %412 = vmatprep.mubr.bf16.mxu0 %v1249_v2  ;;  %601 = vmatprep.mubr.bf16.mxu1 %v1249_v2  ;;  %v1170_v4 = vld [vmem:[%s1675_s3] ss:$8 sps:$4 sm:$0xff]   ;;  %vm355_vm0 = vcmask 130048   ;;  %v1250_v21 = vmov 0.0  }
  0x15   : > { %394 = vmatprep.subr.bf16.mxu0 %v1165_v0  ;;  %s261_s17 = scalar_select %p260_p10, %s1308_s25, 1  ;;  %583 = vmatprep.subr.bf16.mxu1 %v1167_v1  ;;  %v881_v22 = vld [vmem:[%s1676_s4 + $0xf8] sm:$0xff]  ;;  %v880_v24 = vld [vmem:[%s1676_s4 + $0xf0] sm:$0xff]  ;;  %v879_v26 = vld [vmem:[%s1676_s4 + $0xe8] sm:$0xff] }
  0x16   : > { %395 = vmatpush1.bf16.msra.mxu0 %v1169_v3  ;;  %584 = vmatpush1.bf16.msra.mxu1 %v1170_v4  ;;  %v865_v23 = vld [vmem:[%s1676_s4 + $0x78] sm:$0xff]  ;;  %v864_v25 = vld [vmem:[%s1676_s4 + $0x70] sm:$0xff]  ;;  %v863_v27 = vld [vmem:[%s1676_s4 + $0x68] sm:$0xff]  ;;  %s257_s16 = sand.u32 1, %s1239_s22   ;;  %s1251_s11 = smov [#allocation2]  }
  0x17   : > { %s1087_s18 = sshll.u32 %s261_s17, 6  ;;  %1089 = vmatprep.subr.mxu1 %v881_v22  ;;  %v878_v28 = vld [vmem:[%s1676_s4 + $0xe0] sm:$0xff]  ;;  %v877_v30 = vld [vmem:[%s1676_s4 + $0xd8] sm:$0xff]  ;;  %v876_v32 = vld [vmem:[%s1676_s4 + $0xd0] sm:$0xff]  ;;  %s1042_s17 = sshll.u32 %s257_s16, 1 }
  0x18   : > { %s1352_s26 = scalar_lea.vmem %s1672_s0, %s1087_s18  ;;  %s1357_s9 = scalar_lea.vmem %s1673_s1, %s1087_s18  ;;  %v862_v29 = vld [vmem:[%s1676_s4 + $0x60] sm:$0xff]  ;;  %v861_v31 = vld [vmem:[%s1676_s4 + $0x58] sm:$0xff]  ;;  %v860_v33 = vld [vmem:[%s1676_s4 + $0x50] sm:$0xff] }
  0x19   : > { %v1171_v5 = vld [vmem:[%s1352_s26] sm:$0xff]   ;;  %v1173_v7 = vld [vmem:[%s1352_s26 + $0x8] sm:$0xff]   ;;  %v1175_v9 = vld [vmem:[%s1352_s26 + $0x10] sm:$0xff]   ;;  %s1084_s18 = sshll.u32 %s1308_s25, 5  ;;  %s259_s19 = scalar_lea.vmem [#allocation2], %s1042_s17 }
  0x1a   : > { %v1172_v6 = vld [vmem:[%s1357_s9] sm:$0xff]   ;;  %1057 = vmatmul.mubr.msk.bf16.vlgmr.msra.gmra.mxu0 %vm355_vm0, %v1171_v5  ;;  %v1174_v8 = vld [vmem:[%s1357_s9 + $0x8] sm:$0xff]   ;;  %v1176_v10 = vld [vmem:[%s1357_s9 + $0x10] sm:$0xff]   ;;  %s967_s20 = sshll.u32 %s259_s19, 4  ;;  %s965_s29 = scalar_lea.hbm %s1678_s6, %s1084_s18  ;;  %s968_s20 = int_to_ptr.vmem [resolvable:$true] %s967_s20 }
  0x1b   : > { %1075 = vmatmul.mubr.msk.bf16.vlgmr.msra.gmra.mxu1 %vm355_vm0, %v1172_v6  ;;  %422 = vmatprep.mubr.bf16.mxu0 %v1249_v2  ;;  %v1177_v11 = vld [vmem:[%s1352_s26 + $0x18] sm:$0xff]   ;;  %v1179_v13 = vld [vmem:[%s1352_s26 + $0x20] sm:$0xff]   ;;  %v1181_v15 = vld [vmem:[%s1352_s26 + $0x28] sm:$0xff]   ;;  %s1187_s10 = scalar_lea.vmem %s968_s20, 32  ;;  %s1191_s12 = sshll.u32 %s1251_s11, 4  ;;  %s1192_s12 = int_to_ptr.vmem [resolvable:$false] %s1191_s12 }
  0x1c   : > { %611 = vmatprep.mubr.bf16.mxu1 %v1249_v2  ;;  %v1178_v12 = vld [vmem:[%s1357_s9 + $0x18] sm:$0xff]   ;;  %v1180_v14 = vld [vmem:[%s1357_s9 + $0x20] sm:$0xff]   ;;  %v1182_v16 = vld [vmem:[%s1357_s9 + $0x28] sm:$0xff]   ;;  %1090 = vmatpush3.msra.mxu1 %v865_v23  ;;  %p1188_p11 = scmp.ne.s32.totalorder %s968_s20, %s1187_s10  ;;  %s1193_s25 = scalar_lea.vmem %s1192_s12, 64 }
  0x1d   : > { %v1183_v17 = vld [vmem:[%s1352_s26 + $0x30] sm:$0xff]   ;;  %v1185_v19 = vld [vmem:[%s1352_s26 + $0x38] sm:$0xff]   ;;  %1091 = vmatprep.subr.mxu1 %v880_v24  ;;  %v875_v34 = vld [vmem:[%s1676_s4 + $0xc8] sm:$0xff]  ;;  %p1194_p0 = scmp.lt.s32.totalorder %s968_s20, %s1192_s12  ;;  %p1195_p1 = scmp.lt.s32.totalorder %s1193_s25, %s1187_s10 }
  0x1e   : > { %v1184_v18 = vld [vmem:[%s1357_s9 + $0x30] sm:$0xff]   ;;  %v1186_v20 = vld [vmem:[%s1357_s9 + $0x38] sm:$0xff]   ;;  %1092 = vmatpush3.msra.mxu1 %v864_v25  ;;  %v859_v35 = vld [vmem:[%s1676_s4 + $0x48] sm:$0xff]  ;;  %s954_s9 = scalar_lea.sflag [#allocation3], %s257_s16  ;;  %p1189_p12 = pnand %p1188_p11, %p1325_p5 }
  0x1f   : > { %1093 = vmatprep.subr.mxu1 %v879_v26  ;;  %v874_v36 = vld [vmem:[%s1676_s4 + $0xc0] sm:$0xff]  ;;  %v873_v38 = vld [vmem:[%s1676_s4 + $0xb8] sm:$0xff]  ;;  %v872_v40 = vld [vmem:[%s1676_s4 + $0xb0] sm:$0xff]  ;;  %p1196_p2 = por %p1195_p1, %p1194_p0 }
  0x20   : > { %1094 = vmatpush3.msra.mxu1 %v863_v27  ;;  %v858_v37 = vld [vmem:[%s1676_s4 + $0x40] sm:$0xff]  ;;  %v857_v39 = vld [vmem:[%s1676_s4 + $0x38] sm:$0xff]  ;;  %v856_v41 = vld [vmem:[%s1676_s4 + $0x30] sm:$0xff]  ;;  %p1190_p13 = pneg %p1189_p12 }
  0x21   : > { %1095 = vmatprep.subr.mxu1 %v878_v28  ;;  %v871_v42 = vld [vmem:[%s1676_s4 + $0xa8] sm:$0xff]  ;;  %v870_v44 = vld [vmem:[%s1676_s4 + $0xa0] sm:$0xff]  ;;  %v869_v46 = vld [vmem:[%s1676_s4 + $0x98] sm:$0xff] }
  0x22   : > { %1058 = vmatmul.mubr.msk.bf16.gmra.mxu0 %vm355_vm0, %v1173_v7  ;;  %1096 = vmatpush3.msra.mxu1 %v862_v29  ;;  %v855_v43 = vld [vmem:[%s1676_s4 + $0x28] sm:$0xff]  ;;  %v854_v45 = vld [vmem:[%s1676_s4 + $0x20] sm:$0xff]  ;;  %v853_v47 = vld [vmem:[%s1676_s4 + $0x18] sm:$0xff]  ;;  %p1197_p3 = pnand %p1196_p2, %p1190_p13 }
  0x23   : > { %1076 = vmatmul.mubr.msk.bf16.gmra.mxu1 %vm355_vm0, %v1174_v8  ;;  %432 = vmatprep.mubr.bf16.mxu0 %v1249_v2  ;;  %v868_v48 = vld [vmem:[%s1676_s4 + $0x90] sm:$0xff] }
  0x24   : > { %621 = vmatprep.mubr.bf16.mxu1 %v1249_v2  ;;  %1097 = vmatprep.subr.mxu1 %v877_v30  ;;  %v852_v49 = vld [vmem:[%s1676_s4 + $0x10] sm:$0xff] }
  0x25   : > { %1098 = vmatpush3.msra.mxu1 %v861_v31 }
  0x26   : > { %1099 = vmatprep.subr.mxu1 %v876_v32 }
  0x27   : > { %1100 = vmatpush3.msra.mxu1 %v860_v33 }
  0x28   : > { %1101 = vmatprep.subr.mxu1 %v875_v34 }
  0x29   : > { %1102 = vmatpush3.msra.mxu1 %v859_v35 }
  0x2a   : > { %1059 = vmatmul.mubr.msk.bf16.gmra.mxu0 %vm355_vm0, %v1175_v9  ;;  %1103 = vmatprep.subr.mxu1 %v874_v36 }
  0x2b   : > { %1077 = vmatmul.mubr.msk.bf16.gmra.mxu1 %vm355_vm0, %v1176_v10  ;;  %442 = vmatprep.mubr.bf16.mxu0 %v1249_v2 }
  0x2c   : > { %631 = vmatprep.mubr.bf16.mxu1 %v1249_v2  ;;  %1104 = vmatpush3.msra.mxu1 %v858_v37 }
  0x2d   : > { %1105 = vmatprep.subr.mxu1 %v873_v38 }
  0x2e   : > { %1106 = vmatpush3.msra.mxu1 %v857_v39 }
  0x2f   : > { %1107 = vmatprep.subr.mxu1 %v872_v40 }
  0x30   : > { %1108 = vmatpush3.msra.mxu1 %v856_v41 }
  0x31   : > { %1109 = vmatprep.subr.mxu1 %v871_v42 }
  0x32   : > { %1060 = vmatmul.mubr.msk.bf16.gmra.mxu0 %vm355_vm0, %v1177_v11  ;;  %1110 = vmatpush3.msra.mxu1 %v855_v43 }
  0x33   : > { %1078 = vmatmul.mubr.msk.bf16.gmra.mxu1 %vm355_vm0, %v1178_v12  ;;  %452 = vmatprep.mubr.bf16.mxu0 %v1249_v2 }
  0x34   : > { %641 = vmatprep.mubr.bf16.mxu1 %v1249_v2  ;;  %1111 = vmatprep.subr.mxu1 %v870_v44 }
  0x35   : > { %1112 = vmatpush3.msra.mxu1 %v854_v45 }
  0x36   : > { %1113 = vmatprep.subr.mxu1 %v869_v46 }
  0x37   : > { %1114 = vmatpush3.msra.mxu1 %v853_v47 }
  0x38   : > { %1115 = vmatprep.subr.mxu1 %v868_v48 }
  0x39   : > { %1116 = vmatpush3.msra.mxu1 %v852_v49 }
  0x3a   : > { %1061 = vmatmul.mubr.msk.bf16.gmra.mxu0 %vm355_vm0, %v1179_v13 }
  0x3b   : > { %1079 = vmatmul.mubr.msk.bf16.gmra.mxu1 %vm355_vm0, %v1180_v14  ;;  %462 = vmatprep.mubr.bf16.mxu0 %v1249_v2 }
  0x3c   : > { %651 = vmatprep.mubr.bf16.mxu1 %v1249_v2 }
  0x42   : > { %1062 = vmatmul.mubr.msk.bf16.gmra.mxu0 %vm355_vm0, %v1181_v15 }
  0x43   : > { %1080 = vmatmul.mubr.msk.bf16.gmra.mxu1 %vm355_vm0, %v1182_v16  ;;  %472 = vmatprep.mubr.bf16.mxu0 %v1249_v2 }
  0x44   : > { %661 = vmatprep.mubr.bf16.mxu1 %v1249_v2 }
  0x4a   : > { %1063 = vmatmul.mubr.msk.bf16.gmra.mxu0 %vm355_vm0, %v1183_v17 }
  0x4b   : > { %1081 = vmatmul.mubr.msk.bf16.gmra.mxu1 %vm355_vm0, %v1184_v18  ;;  %482 = vmatprep.mubr.bf16.mxu0 %v1249_v2 }
  0x4c   : > { %671 = vmatprep.mubr.bf16.mxu1 %v1249_v2 }
  0x52   : > { %1064 = vmatmul.mubr.msk.bf16.gmra.mxu0 %vm355_vm0, %v1185_v19 }
  0x53   : > { %1082 = vmatmul.mubr.msk.bf16.gmra.mxu1 %vm355_vm0, %v1186_v20  ;;  %843 = vmatprep.mubr.f32.mxu0 %v1250_v21 }
  0xda   : > { %v414_v50 = vpop.f32.mrf.mxu0 }
  0xdb   : > { %v603_v51 = vpop.f32.mrf.mxu1 }
  0xdc   : > { %v1475_v52 = vmul.f32 %v603_v51, %v414_v50  ;;  %v416_v53 = vpop.f32.mrf.mxu0 }
  0xdd   : > { %v746_v54 = vmul.f32 %v603_v51, %v416_v53  ;;  %v605_v55 = vpop.f32.mrf.mxu1 }
  0xde   : > { %1692 = vst [vmem:[#allocation5_spill] sm:$0xff] %v1475_v52  ;;  %v1477_v56 = vmul.f32 %v605_v55, %v416_v53  ;;  %v730_v57 = vmul.f32 %v605_v55, %v414_v50  ;;  %v418_v58 = vpop.f32.mrf.mxu0 }
  0xdf   : > { %v607_v59 = vpop.f32.mrf.mxu1 }
  0xe0   : > { %1693 = vst [vmem:[#allocation6_spill] sm:$0xff] %v1477_v56  ;;  %v1481_v61 = vadd.f32 %v746_v54, %v730_v57  ;;  %v1483_v62 = vmul.f32 %v607_v59, %v418_v58  ;;  %v420_v63 = vpop.f32.mrf.mxu0 }
  0xe1   : > { %v747_v0 = vmul.f32 %v607_v59, %v420_v63  ;;  %v609_v1 = vpop.f32.mrf.mxu1 }
  0xe2   : > { %1694 = vst [vmem:[#allocation7_spill] sm:$0xff] %v1481_v61  ;;  %1695 = vst [vmem:[#allocation8_spill] sm:$0xff] %v1483_v62  ;;  %v1485_v2 = vmul.f32 %v609_v1, %v420_v63  ;;  %v731_v3 = vmul.f32 %v609_v1, %v418_v58  ;;  %v424_v4 = vpop.f32.mrf.mxu0 }
  0xe3   : > { %v613_v5 = vpop.f32.mrf.mxu1 }
  0xe4   : > { %1696 = vst [vmem:[#allocation9_spill] sm:$0xff] %v1485_v2  ;;  %v1489_v7 = vadd.f32 %v747_v0, %v731_v3  ;;  %v1491_v8 = vmul.f32 %v613_v5, %v424_v4  ;;  %v426_v9 = vpop.f32.mrf.mxu0 }
  0xe5   : > { %v748_v10 = vmul.f32 %v613_v5, %v426_v9  ;;  %v615_v11 = vpop.f32.mrf.mxu1 }
  0xe6   : > { %1697 = vst [vmem:[#allocation10_spill] sm:$0xff] %v1489_v7  ;;  %1698 = vst [vmem:[#allocation11_spill] sm:$0xff] %v1491_v8  ;;  %v1493_v12 = vmul.f32 %v615_v11, %v426_v9  ;;  %v732_v13 = vmul.f32 %v615_v11, %v424_v4  ;;  %v428_v14 = vpop.f32.mrf.mxu0 }
  0xe7   : > { %v617_v15 = vpop.f32.mrf.mxu1 }
  0xe8   : > { %1699 = vst [vmem:[#allocation12_spill] sm:$0xff] %v1493_v12  ;;  %v1497_v17 = vadd.f32 %v748_v10, %v732_v13  ;;  %v1499_v18 = vmul.f32 %v617_v15, %v428_v14  ;;  %v430_v19 = vpop.f32.mrf.mxu0 }
  0xe9   : > { %v749_v20 = vmul.f32 %v617_v15, %v430_v19  ;;  %v619_v21 = vpop.f32.mrf.mxu1 }
  0xea   : > { %1700 = vst [vmem:[#allocation13_spill] sm:$0xff] %v1497_v17  ;;  %1701 = vst [vmem:[#allocation14_spill] sm:$0xff] %v1499_v18  ;;  %v1501_v22 = vmul.f32 %v619_v21, %v430_v19  ;;  %v733_v23 = vmul.f32 %v619_v21, %v428_v14  ;;  %v434_v24 = vpop.f32.mrf.mxu0 }
  0xeb   : > { %v623_v25 = vpop.f32.mrf.mxu1 }
  0xec   : > { %1702 = vst [vmem:[#allocation15_spill] sm:$0xff] %v1501_v22  ;;  %v1505_v27 = vadd.f32 %v749_v20, %v733_v23  ;;  %v1507_v28 = vmul.f32 %v623_v25, %v434_v24  ;;  %v436_v29 = vpop.f32.mrf.mxu0 }
  0xed   : > { %v750_v30 = vmul.f32 %v623_v25, %v436_v29  ;;  %v625_v31 = vpop.f32.mrf.mxu1 }
  0xee   : > { %1703 = vst [vmem:[#allocation16_spill] sm:$0xff] %v1505_v27  ;;  %1704 = vst [vmem:[#allocation17_spill] sm:$0xff] %v1507_v28  ;;  %v1509_v32 = vmul.f32 %v625_v31, %v436_v29  ;;  %v734_v33 = vmul.f32 %v625_v31, %v434_v24  ;;  %v1511_v34 = vpop.f32.mrf.mxu0 }
  0xef   : > { %v1513_v35 = vpop.f32.mrf.mxu1 }
  0xf0   : > { %1705 = vst [vmem:[#allocation18_spill] sm:$0xff] %v1509_v32  ;;  %v1517_v37 = vadd.f32 %v750_v30, %v734_v33  ;;  %v1519_v38 = vpop.f32.mrf.mxu0 }
  0xf1   : > { %v1521_v39 = vpop.f32.mrf.mxu1 }
  0xf2   : > { %1706 = vst [vmem:[#allocation19_spill] sm:$0xff] %v1517_v37  ;;  %1707 = vst [vmem:[#allocation20_spill] sm:$0xff] %v1521_v39  ;;  %v1523_v40 = vpop.f32.mrf.mxu0 }
  0xf3   : > { %v1525_v41 = vpop.f32.mrf.mxu1 }
  0xf4   : > { %v1527_v42 = vpop.f32.mrf.mxu0 }
  0xf5   : > { %v1529_v43 = vpop.f32.mrf.mxu1 }
  0xf6   : > { %v1531_v44 = vpop.f32.mrf.mxu0 }
  0xf7   : > { %v1533_v45 = vpop.f32.mrf.mxu1 }
  0xf8   : > { %v1535_v46 = vpop.f32.mrf.mxu0 }
  0xf9   : > { %v1537_v47 = vpop.f32.mrf.mxu1 }
  0xfa   : > { %v1539_v48 = vpop.f32.mrf.mxu0 }
  0xfb   : > { %v1541_v49 = vpop.f32.mrf.mxu1 }
  0xfc   : > { %v1543_v50 = vpop.f32.mrf.mxu0 }
  0xfd   : > { %v1545_v51 = vpop.f32.mrf.mxu1 }
  0xfe   : > { %v1547_v53 = vpop.f32.mrf.mxu0 }
  0xff   : > { %v1549_v54 = vpop.f32.mrf.mxu1 }
 0x100   : > { %v1551_v55 = vpop.f32.mrf.mxu0 }
 0x101   : > { %v1553_v57 = vpop.f32.mrf.mxu1 }
 0x102   : > { %v1555_v58 = vpop.f32.mrf.mxu0 }
 0x103   : > { %v1557_v59 = vpop.f32.mrf.mxu1 }
 0x104   : > { %v466_v63 = vpop.f32.mrf.mxu0 }
 0x105   : > { %v655_v0 = vpop.f32.mrf.mxu1 }
 0x106   : > { %v468_v1 = vpop.f32.mrf.mxu0 }
 0x107   : > { %v657_v3 = vpop.f32.mrf.mxu1 }
 0x108   : > { %v470_v4 = vpop.f32.mrf.mxu0 }
 0x109   : > { %v659_v5 = vpop.f32.mrf.mxu1  ;;  %v757_v37 = vmul.f32 %v657_v3, %v470_v4 }
 0x10a   : > { %v474_v9 = vpop.f32.mrf.mxu0  ;;  %v741_v39 = vmul.f32 %v659_v5, %v468_v1 }
 0x10b   : > { %v663_v10 = vpop.f32.mrf.mxu1 }
 0x10c   : > { %v476_v11 = vpop.f32.mrf.mxu0 }
 0x10d   : > { %v665_v13 = vpop.f32.mrf.mxu1  ;;  %v758_v17 = vmul.f32 %v663_v10, %v476_v11 }
 0x10e   : > { %v478_v14 = vpop.f32.mrf.mxu0  ;;  %v742_v22 = vmul.f32 %v665_v13, %v474_v9  ;;  %v710_v27 = vmul.f32 %v665_v13, %v476_v11  ;;  %v1714_v11 = vld [vmem:[#allocation14_spill] sm:$0xff]  ;;  %v1715_v13 = vld [vmem:[#allocation15_spill] sm:$0xff] }
 0x10f   : > { %v667_v15 = vpop.f32.mrf.mxu1 }
 0x110   : > { %v480_v19 = vpop.f32.mrf.mxu0  ;;  %v695_v32 = vmul.f32 %v667_v15, %v478_v14 }
 0x111   : > { %v669_v20 = vpop.f32.mrf.mxu1  ;;  %v759_v61 = vmul.f32 %v667_v15, %v480_v19  ;;  %v1719_v15 = vld [vmem:[#allocation12_spill] sm:$0xff] }
 0x112   : > { %v484_v21 = vpop.f32.mrf.mxu0  ;;  %v743_v2 = vmul.f32 %v669_v20, %v478_v14  ;;  %v711_v12 = vmul.f32 %v669_v20, %v480_v19  ;;  %v1716_v14 = vsub.f32 %v1714_v11, %v1715_v13  ;;  %v1721_v20 = vld [vmem:[#allocation10_spill] sm:$0xff] }
 0x113   : > { %v673_v23 = vpop.f32.mrf.mxu1 }
 0x114   : > { %v486_v24 = vpop.f32.mrf.mxu0  ;;  %v696_v8 = vmul.f32 %v673_v23, %v484_v21 }
 0x115   : > { %v675_v25 = vpop.f32.mrf.mxu1  ;;  %v760_v33 = vmul.f32 %v673_v23, %v486_v24  ;;  %v1723_v23 = vld [vmem:[#allocation9_spill] sm:$0xff] }
 0x116   : > { %v488_v29 = vpop.f32.mrf.mxu0  ;;  %v744_v16 = vmul.f32 %v675_v25, %v484_v21  ;;  %v712_v52 = vmul.f32 %v675_v25, %v486_v24  ;;  %v694_v24 = vmul.f32 %v663_v10, %v474_v9  ;;  %v727_v25 = vsub.f32 %v695_v32, %v711_v12  ;;  %v1709_v9 = vld [vmem:[#allocation19_spill] sm:$0xff]  ;;  %v1711_v10 = vld [vmem:[#allocation18_spill] sm:$0xff]  ;;  %v1722_v21 = vld [vmem:[#allocation8_spill] sm:$0xff] }
 0x117   : > { %v677_v30 = vpop.f32.mrf.mxu1 }
 0x118   : > { %v490_v31 = vpop.f32.mrf.mxu0  ;;  %v697_v26 = vmul.f32 %v677_v30, %v488_v29  ;;  %v776_v18 = vadd.f32 %v760_v33, %v744_v16  ;;  %v728_v28 = vsub.f32 %v696_v8, %v712_v52  ;;  %v708_v16 = vmul.f32 %v655_v0, %v466_v63  ;;  %v1725_v33 = vld [vmem:[#allocation7_spill] sm:$0xff] }
 0x119   : > { %v761_v60 = vmul.f32 %v677_v30, %v490_v31  ;;  %v679_v6 = vpop.f32.mrf.mxu1  ;;  %v775_v30 = vadd.f32 %v759_v61, %v743_v2  ;;  %v755_v52 = vmul.f32 %v1549_v54, %v1551_v55  ;;  %v739_v61 = vmul.f32 %v1553_v57, %v1547_v53 }
 0x11a   : > { %v713_v36 = vmul.f32 %v679_v6, %v490_v31  ;;  %v745_v56 = vmul.f32 %v679_v6, %v488_v29  ;;  %v709_v6 = vmul.f32 %v659_v5, %v470_v4  ;;  %v707_v2 = vmul.f32 %v1553_v57, %v1551_v55  ;;  %v778_v31 = vld [vmem:[%s1677_s5] sm:$0x3] }
 0x11b   : > { %v692_v8 = vmul.f32 %v1557_v59, %v1555_v58  ;;  %v771_v55 = vadd.f32 %v755_v52, %v739_v61  ;;  %v705_v57 = vmul.f32 %v1537_v47, %v1535_v46  ;;  %v1724_v29 = vsub.f32 %v1722_v21, %v1723_v23 }
 0x11c   : > { %v729_v62 = vsub.f32 %v697_v26, %v713_v36  ;;  %v777_v7 = vadd.f32 %v761_v60, %v745_v56  ;;  %v756_v56 = vmul.f32 %v1557_v59, %v466_v63  ;;  %v740_v60 = vmul.f32 %v655_v0, %v1555_v58 }
 0x11d   : > { %v774_v26 = vadd.f32 %v758_v17, %v742_v22  ;;  %v726_v36 = vsub.f32 %v694_v24, %v710_v27  ;;  %v754_v17 = vmul.f32 %v1541_v49, %v1543_v50  ;;  %v706_v27 = vmul.f32 %v1545_v51, %v1543_v50 }
 0x11e   : > { %779 = vmatprep.subr.mxu0 %v777_v7  ;;  %v693_v7 = vmul.f32 %v657_v3, %v468_v1  ;;  %v772_v22 = vadd.f32 %v756_v56, %v740_v60  ;;  %v724_v32 = vsub.f32 %v692_v8, %v708_v16  ;;  %v690_v58 = vmul.f32 %v1541_v49, %v1539_v48  ;;  %v851_v56 = vld [vmem:[%s1676_s4 + $0x8] sm:$0xff]  ;;  %v866_v60 = vld [vmem:[%s1676_s4 + $0x80] sm:$0xff] }
 0x11f   : > { %780 = vmatpush1.msra.mxu0 %v729_v62  ;;  %v773_v62 = vadd.f32 %v757_v37, %v741_v39  ;;  %v753_v37 = vmul.f32 %v1533_v45, %v1535_v46  ;;  %v737_v39 = vmul.f32 %v1537_v47, %v1531_v44  ;;  %v704_v59 = vmul.f32 %v1529_v43, %v1527_v42 }
 0x120   : > { %781 = vmatprep.subr.mxu0 %v776_v18  ;;  %v725_v12 = vsub.f32 %v693_v7, %v709_v6  ;;  %v738_v18 = vmul.f32 %v1545_v51, %v1539_v48  ;;  %v752_v51 = vmul.f32 %v1525_v41, %v1527_v42  ;;  %v689_v63 = vmul.f32 %v1533_v45, %v1531_v44  ;;  %v1708_v48 = vld [vmem:[#allocation20_spill] sm:$0xff]  ;;  %v1727_v6 = vld [vmem:[#allocation6_spill] sm:$0xff] }
 0x121   : > { %782 = vmatpush1.msra.mxu0 %v728_v28  ;;  %v691_v28 = vmul.f32 %v1549_v54, %v1547_v53  ;;  %v736_v53 = vmul.f32 %v1529_v43, %v1523_v40  ;;  %v722_v46 = vsub.f32 %v690_v58, %v706_v27  ;;  %v751_v47 = vmul.f32 %v1513_v35, %v1519_v38 }
 0x122   : > { %783 = vmatprep.subr.mxu0 %v775_v30  ;;  %v770_v54 = vadd.f32 %v754_v17, %v738_v18  ;;  %v735_v49 = vmul.f32 %v1708_v48, %v1511_v34  ;;  %v769_v0 = vadd.f32 %v753_v37, %v737_v39  ;;  %v703_v1 = vmul.f32 %v1708_v48, %v1519_v38  ;;  %v1710_v38 = vld [vmem:[#allocation17_spill] sm:$0xff] }
 0x123   : > { %784 = vmatpush1.msra.mxu0 %v727_v25  ;;  %v723_v50 = vsub.f32 %v691_v28, %v707_v2  ;;  %v688_v3 = vmul.f32 %v1525_v41, %v1523_v40  ;;  %v721_v42 = vsub.f32 %v689_v63, %v705_v57  ;;  %v768_v43 = vadd.f32 %v752_v51, %v736_v53  ;;  %v1713_v41 = vld [vmem:[#allocation16_spill] sm:$0xff]  ;;  %v1726_v30 = vld [vmem:[#allocation5_spill] sm:$0xff] }
 0x124   : > { %785 = vmatprep.subr.mxu0 %v774_v26  ;;  %v687_v44 = vmul.f32 %v1513_v35, %v1511_v34  ;;  %v767_v4 = vadd.f32 %v751_v47, %v735_v49  ;;  %v1712_v40 = vsub.f32 %v1710_v38, %v1711_v10  ;;  %v1717_v34 = vld [vmem:[#allocation13_spill] sm:$0xff]  ;;  %v1718_v35 = vld [vmem:[#allocation11_spill] sm:$0xff]  ;;  %v1728_v24 = vsub.f32 %v1726_v30, %v1727_v6 }
 0x125   : > { %786 = vmatpush1.msra.mxu0 %v726_v36  ;;  %v720_v45 = vsub.f32 %v688_v3, %v704_v59  ;;  %v1720_v19 = vsub.f32 %v1718_v35, %v1719_v15  ;;  %v867_v25 = vld [vmem:[%s1676_s4 + $0x88] sm:$0xff]  ;;  %v850_v26 = vld [vmem:[%s1676_s4] sm:$0xff] }
 0x126   : > { %787 = vmatprep.subr.mxu0 %v773_v62  ;;  %v719_v5 = vsub.f32 %v687_v44, %v703_v1  ;;  %1117 = vmatprep.subr.mxu1 %v867_v25 }
 0x127   : > { %788 = vmatpush1.msra.mxu0 %v725_v12  ;;  %1118 = vmatpush3.msra.mxu1 %v851_v56 }
 0x128   : > { %789 = vmatprep.subr.mxu0 %v772_v22  ;;  %1119 = vmatprep.subr.mxu1 %v866_v60 }
 0x129   : > { %790 = vmatpush1.msra.mxu0 %v724_v32  ;;  %1120 = vmatpush3.msra.mxu1 %v850_v26 }
 0x12a   : > { %791 = vmatprep.subr.mxu0 %v771_v55 }
 0x12b   : > { %792 = vmatpush1.msra.mxu0 %v723_v50 }
 0x12c   : > { %793 = vmatprep.subr.mxu0 %v770_v54 }
 0x12d   : > { %794 = vmatpush1.msra.mxu0 %v722_v46 }
 0x12e   : > { %795 = vmatprep.subr.mxu0 %v769_v0 }
 0x12f   : > { %796 = vmatpush1.msra.mxu0 %v721_v42 }
 0x130   : > { %797 = vmatprep.subr.mxu0 %v768_v43 }
 0x131   : > { %798 = vmatpush1.msra.mxu0 %v720_v45 }
 0x132   : > { %799 = vmatprep.subr.mxu0 %v767_v4 }
 0x133   : > { %800 = vmatpush1.msra.mxu0 %v719_v5 }
 0x134   : > { %801 = vmatprep.subr.mxu0 %v1709_v9 }
 0x135   : > { %802 = vmatpush1.msra.mxu0 %v1712_v40 }
 0x136   : > { %803 = vmatprep.subr.mxu0 %v1713_v41 }
 0x137   : > { %804 = vmatpush1.msra.mxu0 %v1716_v14 }
 0x138   : > { %805 = vmatprep.subr.mxu0 %v1717_v34 }
 0x139   : > { %806 = vmatpush1.msra.mxu0 %v1720_v19 }
 0x13a   : > { %807 = vmatprep.subr.mxu0 %v1721_v20 }
 0x13b   : > { %808 = vmatpush1.msra.mxu0 %v1724_v29 }
 0x13c   : > { %809 = vmatprep.subr.mxu0 %v1725_v33 }
 0x13d   : > { %810 = vmatpush1.msra.mxu0 %v1728_v24 }
 0x13e   : > { %844 = vmatmul.mubr.f32.vlgmr.msra.gmra.mxu0 %v778_v31 }
 0x1fe   : > { %v845_v16 = vpop.f32.mrf.mxu0 }
 0x200   : > { %v847_v7 = vpop.f32.mrf.mxu0 }
 0x201   : > { %946 = vmatprep.mubr.f32.mxu1 %v847_v7 }
 0x202   : > { %947 = vmatmul.mubr.f32.vlgmr.msra.gmra.mxu1 %v845_v16 }
 0x2c2   : > { %v1121_v36 = vpop.f32.mrf.mxu1 }
 0x2c4   : > { %v1122_v52 = vpop.f32.mrf.mxu1 }
 0x2c5   : > { %v1123_v61 = vadd.f32 %v1122_v52, %v1121_v36 }
 0x2c7   : > { %952 = vst [vmem:[%s259_s19] sm:$0x3] %v1123_v61 }
 0x2c8   : > { %1200 = shalt.err (!%p1197_p3)
}
 0x2c9   : > { %s1201_s13 = scalar_lea.hbm %s965_s29, 32  ;;  %s1205_s16 = scalar_lea.hbm %s1678_s6, 64 }
 0x2ca   : > { %p1202_p4 = scmp.ne.s32.totalorder %s965_s29, %s1201_s13  ;;  %p1206_p9 = scmp.lt.s32.totalorder %s965_s29, %s1678_s6 }
 0x2cb   : > { %p1207_p10 = scmp.lt.s32.totalorder %s1205_s16, %s1201_s13 }
 0x2cc   : > { %p1203_p7 = pnand %p1202_p4, %p1325_p5 }
 0x2cd   : > { %p1208_p11 = por %p1207_p10, %p1206_p9 }
 0x2ce   : > { %p1204_p8 = pneg %p1203_p7 }
 0x2d0   : > { %p1209_p12 = pnand %p1208_p11, %p1204_p8 }
 0x2d2   : > { %1212 = shalt.err (!%p1209_p12)
}
 0x2d3   : > { %1124 = dma.vmem_to_hbm [thread:$0]  (%p1325_p5), %s968_s20, 32, %s965_s29, %s954_s9  }
 0x2d4 PF: > { %p1130_p13 = scmp.ge.s32.totalorder %s1247_s24, 2  ;;  %s979_s19 = sand.u32 1, %s1235_s21  }
 0x2d5   : > { %s980_s26 = scalar_lea.sflag [#allocation3], %s979_s19 }
 0x2d6   : > { %p1127_p0 = pnand %p1130_p13, %p1329_p6 }
 0x2d8   : > { %p1128_p1 = pneg %p1127_p0 }
 0x2da   : > { %1230 = dma.done.wait (%p1128_p1), %s980_s26, 32  }
 0x2db   : > { %1232 = vsyncadd (%p1128_p1), %s980_s26, 4294967264  ;;  %p16_p2 = scmp.ge.s32.totalorder %s1312_s27, 4   ;;  %s1729_s21 = smov %s1239_s22 }
 0x2dc   : > { %s1730_s22 = smov %s1243_s23  ;;  %s1731_s23 = smov %s1323_s30 }
 0x2dd   : > { %s1732_s24 = smov %s1312_s27  ;;  %18 = sbr.rel (!%p16_p2) target bundleno = 3 (0x3), region = 82 }
 0x2e2   :  { %985 = vsyncpa [#allocation3], 1 }
 0x2e3   :  { %987 = vsyncpa [#allocation3 + $0x1], 1 }

</bundles_post_ra>
